<compile_context>
chip_gen: v6e
topology: v6e:2x2x1
jax: 0.10.0
libtpu: 0.0.40
codegen_flags: <defaults>
</compile_context>

<pallas_src>
import functools

import jax
import jax.numpy as jnp
from jax import lax
from jax.experimental import pallas as pl
from jax.experimental.pallas import tpu as pltpu

_LANE = 128


def _round_up(x, m):
    return (x + m - 1) // m * m


def _unet2_kernel(wb_ref, x_ref, o_ref, acc_ref, *, hw, tk, n_chunks, mask_cols, unroll):
    """One (row-tile, col-tile) grid step of mean-over-HW followed by Linear(1,1).

    wb_ref : SMEM (2,) f32        [linear weight, linear bias]
    x_ref  : VMEM (tn, tk)        input tile in native dtype
    o_ref  : VMEM (tn, 128) f32   lane-dense output slab (column 0 = result)
    acc_ref: VMEM (tn, 128) f32   lane-resident partial-sum accumulator
    """
    k = pl.program_id(1)
    last = pl.num_programs(1) - 1

    @pl.when(k == 0)
    def _init():
        acc_ref[...] = jnp.zeros_like(acc_ref)

    col0 = k * tk  # element offset of this column tile along hw

    # Stream the tile in 128-lane chunks: pure vld + VPU adds; the partial sum
    # stays lane-resident, so no XLU cross-lane reduction per grid step.
    def chunk_body(masked):
        def body(j, partial):
            off = pl.multiple_of(j * _LANE, _LANE)
            chunk = x_ref[:, pl.ds(off, _LANE)].astype(jnp.float32)
            if masked:  # static: only emitted for the tail-tile code path
                col = lax.broadcasted_iota(jnp.int32, chunk.shape, 1) + (col0 + off)
                chunk = jnp.where(col < hw, chunk, 0.0)
            return partial + chunk
        return body

    def accumulate(masked):
        acc_ref[...] = lax.fori_loop(
            0, n_chunks, chunk_body(masked), acc_ref[...], unroll=unroll)

    if not mask_cols:
        accumulate(False)
    else:
        # Only the final column tile can read past hw; pay the mask only there.
        @pl.when(k != last)
        def _bulk():
            accumulate(False)

        @pl.when(k == last)
        def _tail():
            accumulate(True)

    # Epilogue: one cross-lane reduction + Linear(1, 1), lane-dense store.
    @pl.when(k == last)
    def _finish():
        total = jnp.sum(acc_ref[...], axis=-1, keepdims=True)   # (tn, 1)
        mean = total * (1.0 / hw)                               # AdaptiveAvgPool2d((1,1))
        out = mean * wb_ref[0] + wb_ref[1]                      # Linear(1, 1)
        o_ref[...] = jnp.broadcast_to(out, o_ref.shape).astype(o_ref.dtype)


def unet2_forward(x, weight, bias, *, target_tile_bytes=8 << 20):
    """Replicates UNet2.forward: returns (x, Linear(AdaptiveAvgPool2d(x).view(N, -1)))."""
    n, c, h, w_ = x.shape
    assert c == 1, "nn.Linear(1, 1) on pooled+flattened features implies C == 1"
    hw = c * h * w_

    # Flatten spatial dims; keep native dtype (bf16 streams half the HBM bytes;
    # accumulation is always f32 inside the kernel). No padding copy is made.
    x_flat = x.reshape(n, hw)
    itemsize = x_flat.dtype.itemsize

    # Row tile: >= 2 blocks when the batch is big enough so both v7x
    # TensorCores get work on the "parallel" axis (free on single-TC v5e/v6e).
    if n >= 16:
        tn = min(256, _round_up(pl.cdiv(n, 2), 8))
    else:
        tn = n                                  # == full dim -> layout-legal
    n_row = pl.cdiv(n, tn)

    # Column tile from a per-buffer byte budget (multiple of 128 lanes) so each
    # grid step moves several MiB and the ~0.35us per-step overhead disappears.
    hw_lanes = _round_up(hw, _LANE)
    tk = max(_LANE, (target_tile_bytes // (tn * itemsize)) // _LANE * _LANE)
    tk = min(tk, hw_lanes)
    n_col = pl.cdiv(hw, tk)                     # grid covers the TRUE hw
    mask_cols = (n_col * tk) != hw              # last tile reads past hw
    n_chunks = tk // _LANE
    unroll = min(8, n_chunks)

    # VMEM budget: double-buffered input + double-buffered out + acc scratch.
    vmem_needed = 2 * tn * tk * itemsize + 3 * tn * _LANE * 4
    vmem_limit = min(48 << 20, max(16 << 20, int(vmem_needed * 1.25) + (2 << 20)))

    wb = jnp.stack([weight.reshape(()), bias.reshape(())]).astype(jnp.float32)

    kernel = functools.partial(_unet2_kernel, hw=hw, tk=tk, n_chunks=n_chunks,
                               mask_cols=mask_cols, unroll=unroll)

    cost = pl.CostEstimate(
        flops=int(n * hw),
        transcendentals=0,
        bytes_accessed=int(n * hw * itemsize + n * _LANE * 4),
    )

    out_lane = pl.pallas_call(
        kernel,
        out_shape=jax.ShapeDtypeStruct((n, _LANE), jnp.float32),
        grid_spec=pltpu.PrefetchScalarGridSpec(
            num_scalar_prefetch=0,
            grid=(n_row, n_col),
            in_specs=[
                pl.BlockSpec(memory_space=pltpu.SMEM),                 # [w, b]
                pl.BlockSpec((tn, tk), lambda i, k: (i, k)),           # streamed input
            ],
            out_specs=pl.BlockSpec((tn, _LANE), lambda i, k: (i, 0)),  # lane-dense out
            scratch_shapes=[pltpu.VMEM((tn, _LANE), jnp.float32)],
        ),
        compiler_params=pltpu.CompilerParams(
            dimension_semantics=("parallel", "arbitrary"),
            vmem_limit_bytes=vmem_limit,
        ),
        cost_estimate=cost,
    )(wb, x_flat)

    out = out_lane[:, :1]                      # (N, 1), matching Linear(1, 1)
    return x, out


def _reference(x, weight, bias):
    pooled = jnp.mean(x.astype(jnp.float32), axis=(2, 3)).reshape(x.shape[0], -1)
    return pooled @ weight.T + bias


if __name__ == "__main__":
    key = jax.random.PRNGKey(0)
    kx, kw, kb, kx2, kx3 = jax.random.split(key, 5)

    # Deterministic synthetic nn.Linear(1, 1) params: weight (1,1), bias (1,).
    weight = jax.random.uniform(kw, (1, 1), minval=-1.0, maxval=1.0, dtype=jnp.float32)
    bias = jax.random.uniform(kb, (1,), minval=-1.0, maxval=1.0, dtype=jnp.float32)

    # Case 1: batch=2, channels=1 (required by Linear(1,1)), spatial 16x16
    # -> single grid step, no tail mask.
    x = jax.random.normal(kx, (2, 1, 16, 16), dtype=jnp.float32)
    x_out, out = unet2_forward(x, weight, bias)
    jax.block_until_ready(out)
    jax.block_until_ready(x_out)
    ref = _reference(x, weight, bias)
    assert x_out.shape == x.shape
    assert jnp.allclose(out, ref, atol=1e-5, rtol=1e-4), (out, ref)

    # Case 2: hw = 50*50 = 2500 (not a multiple of 128) in bf16
    # -> ragged tail handled by the in-kernel mask, no wrapper pad, half-byte streaming.
    x2 = jax.random.normal(kx2, (4, 1, 50, 50), dtype=jnp.bfloat16)
    x2_out, out2 = unet2_forward(x2, weight, bias)
    jax.block_until_ready(out2)
    ref2 = _reference(x2, weight, bias)
    assert x2_out.shape == x2.shape
    assert jnp.allclose(out2, ref2, atol=1e-3, rtol=1e-3), (out2, ref2)

    # Case 3: tiny tile budget forces a multi-step column reduction
    # (k > 0 accumulation path) plus the pl.when-gated masked tail tile.
    x3 = jax.random.normal(kx3, (4, 1, 50, 50), dtype=jnp.float32)
    x3_out, out3 = unet2_forward(x3, weight, bias, target_tile_bytes=4096)
    jax.block_until_ready(out3)
    ref3 = _reference(x3, weight, bias)
    assert jnp.allclose(out3, ref3, atol=1e-5, rtol=1e-4), (out3, ref3)

    # Case 4: batch=16 exercises the split row axis (n_row=2, "parallel" -> 2 TCs on v7x).
    x4 = jax.random.normal(kx, (16, 1, 16, 16), dtype=jnp.float32)
    x4_out, out4 = unet2_forward(x4, weight, bias)
    jax.block_until_ready(out4)
    ref4 = _reference(x4, weight, bias)
    assert jnp.allclose(out4, ref4, atol=1e-5, rtol=1e-4), (out4, ref4)

    print("KERNEL_OK")
</pallas_src>

<mosaic_0001>
module attributes {stable_mosaic.version = 11 : i64} {
  func.func @_unet2_kernel(%arg0: i32, %arg1: i32, %arg2: memref<2xf32, #tpu.memory_space<smem>>, %arg3: memref<2x256xf32, #tpu.memory_space<vmem>>, %arg4: memref<2x128xf32, #tpu.memory_space<vmem>>, %arg5: memref<2x128xf32, #tpu.memory_space<vmem>>) attributes {dimension_semantics = [#tpu.dimension_semantics<parallel>, #tpu.dimension_semantics<arbitrary>], iteration_bounds = array<i64: 1, 1>, scalar_prefetch = 0 : i64, scratch_operands = 1 : i64, tpu.core_type = #tpu.core_type<tc>, window_params = [{transform_indices = @transform_0, window_bounds = array<i64: 2>}, {transform_indices = @transform_1, window_bounds = array<i64: 2, 256>}, {transform_indices = @transform_2, window_bounds = array<i64: 2, 128>}]} {
    %c0_i32 = arith.constant 0 : i32
    %0 = arith.cmpi eq, %arg1, %c0_i32 : i32
    %1 = arith.extui %0 : i1 to i32
    %c0_i32_0 = arith.constant 0 : i32
    %2 = arith.cmpi ne, %1, %c0_i32_0 : i32
    scf.if %2 {
      %cst = arith.constant 0.000000e+00 : f32
      %18 = vector.broadcast %cst : f32 to vector<2x128xf32>
      %c0_10 = arith.constant 0 : index
      %c0_11 = arith.constant 0 : index
      %19 = vector.load %arg5[%c0_10, %c0_11] : memref<2x128xf32, #tpu.memory_space<vmem>>, vector<2x128xf32>
      tpu.vector_store %arg5[%c0_10, %c0_11], %18 {strides = array<i32>} : memref<2x128xf32, #tpu.memory_space<vmem>>, vector<2x128xf32>,
    } else {
    }
    %c0 = arith.constant 0 : index
    %c0_1 = arith.constant 0 : index
    %3 = vector.load %arg5[%c0, %c0_1] : memref<2x128xf32, #tpu.memory_space<vmem>>, vector<2x128xf32>
    %c0_i32_2 = arith.constant 0 : i32
    %c128_i32 = arith.constant 128 : i32
    %4 = arith.muli %c0_i32_2, %c128_i32 : i32
    %5 = tpu.assume_multiple %4, 128 : i32
    %c0_3 = arith.constant 0 : index
    %6 = arith.index_cast %5 : i32 to index
    %7 = vector.load %arg3[%c0_3, %6] : memref<2x256xf32, #tpu.memory_space<vmem>>, vector<2x128xf32>
    %8 = arith.addf %3, %7 : vector<2x128xf32>
    %c1_i32 = arith.constant 1 : i32
    %c128_i32_4 = arith.constant 128 : i32
    %9 = arith.muli %c1_i32, %c128_i32_4 : i32
    %10 = tpu.assume_multiple %9, 128 : i32
    %c0_5 = arith.constant 0 : index
    %11 = arith.index_cast %10 : i32 to index
    %12 = vector.load %arg3[%c0_5, %11] : memref<2x256xf32, #tpu.memory_space<vmem>>, vector<2x128xf32>
    %13 = arith.addf %8, %12 : vector<2x128xf32>
    %c2_i32 = arith.constant 2 : i32
    %c0_6 = arith.constant 0 : index
    %c0_7 = arith.constant 0 : index
    %14 = vector.load %arg5[%c0_6, %c0_7] : memref<2x128xf32, #tpu.memory_space<vmem>>, vector<2x128xf32>
    tpu.vector_store %arg5[%c0_6, %c0_7], %13 {strides = array<i32>} : memref<2x128xf32, #tpu.memory_space<vmem>>, vector<2x128xf32>,
    %c0_i32_8 = arith.constant 0 : i32
    %15 = arith.cmpi eq, %arg1, %c0_i32_8 : i32
    %16 = arith.extui %15 : i1 to i32
    %c0_i32_9 = arith.constant 0 : i32
    %17 = arith.cmpi ne, %16, %c0_i32_9 : i32
    scf.if %17 {
      %c0_10 = arith.constant 0 : index
      %c0_11 = arith.constant 0 : index
      %18 = vector.load %arg5[%c0_10, %c0_11] : memref<2x128xf32, #tpu.memory_space<vmem>>, vector<2x128xf32>
      %cst = arith.constant dense<0.000000e+00> : vector<2xf32>
      %19 = vector.multi_reduction <add>, %18, %cst [1] : vector<2x128xf32> to vector<2xf32>
      %20 = vector.shape_cast %19 : vector<2xf32> to vector<2x1xf32>
      %cst_12 = arith.constant 3.906250e-03 : f32
      %21 = vector.broadcast %cst_12 : f32 to vector<2x1xf32>
      %22 = arith.mulf %20, %21 : vector<2x1xf32>
      %c0_13 = arith.constant 0 : index
      %23 = memref.load %arg2[%c0_13] : memref<2xf32, #tpu.memory_space<smem>>
      %24 = vector.broadcast %23 : f32 to vector<2x1xf32>
      %25 = arith.mulf %22, %24 : vector<2x1xf32>
      %c1 = arith.constant 1 : index
      %26 = memref.load %arg2[%c1] : memref<2xf32, #tpu.memory_space<smem>>
      %27 = vector.broadcast %26 : f32 to vector<2x1xf32>
      %28 = arith.addf %25, %27 : vector<2x1xf32>
      %29 = vector.shape_cast %28 : vector<2x1xf32> to vector<2x1xf32>
      %30 = vector.broadcast %29 : vector<2x1xf32> to vector<2x128xf32>
      %c0_14 = arith.constant 0 : index
      %c0_15 = arith.constant 0 : index
      %31 = vector.load %arg4[%c0_14, %c0_15] : memref<2x128xf32, #tpu.memory_space<vmem>>, vector<2x128xf32>
      tpu.vector_store %arg4[%c0_14, %c0_15], %30 {strides = array<i32>} : memref<2x128xf32, #tpu.memory_space<vmem>>, vector<2x128xf32>,
    } else {
    }
    return
  }
  func.func @transform_0(%arg0: i32, %arg1: i32) -> i32 {
    %c0_i32 = arith.constant 0 : i32
    %c0_i32_0 = arith.constant 0 : i32
    return %c0_i32 : i32
  }
  func.func @transform_1(%arg0: i32, %arg1: i32) -> (i32, i32) {
    %c0_i32 = arith.constant 0 : i32
    return %arg0, %arg1 : i32, i32
  }
  func.func @transform_2(%arg0: i32, %arg1: i32) -> (i32, i32) {
    %c0_i32 = arith.constant 0 : i32
    %c0_i32_0 = arith.constant 0 : i32
    return %arg0, %c0_i32 : i32, i32
  }
}

</mosaic_0001>

<bundles_post_ra>
// kernel: tpu_custom_call.1
= control target key start
LH: loop header
LB: loop body
LE: loop exit
PB: predicated region body
PF: predicated region fallthrough
CT: control target
= control target key end

     0   :  { %7 = vsyncpa [#allocation6], 0  ;;  %s166_s0 = inlined_call_operand.hbm [shape: f32[2], index: 0, kind: input, shape index: {}]   ;;  %s167_s1 = inlined_call_operand.hbm [shape: f32[2,256], index: 1, kind: input, shape index: {}]   ;;  %s168_s2 = inlined_call_operand.hbm [shape: f32[2,128], index: 2, kind: output, shape index: {}]  }
   0x1   :  { %8 = vsyncpa [#allocation4], 0 }
   0x2   :  { %9 = vsyncpa [#allocation5], 0  ;;  %s138_s9 = smov [#allocation3]   ;;  %s139_s12 = smov [#allocation7]  }
   0x3   :  { %17 = dma.hbm_to_smem %s166_s0, 16, %s138_s9, [#allocation6]  }
   0x4   :  { %s24_s13 = sshll.u32 %s139_s12, 4  ;;  %s25_s13 = int_to_ptr.vmem [resolvable:$true] %s24_s13 }
   0x5   :  { %s100_s14 = scalar_lea.vmem %s25_s13, 64  ;;  %p105_p1 = scmp.lt.s32.totalorder %s25_s13, %s25_s13 }
   0x6   :  { %p101_p0 = scmp.ne.s32.totalorder %s25_s13, %s100_s14  ;;  %p106_p2 = scmp.lt.s32.totalorder %s100_s14, %s100_s14 }
   0x8   :  { %p107_p3 = por %p106_p2, %p105_p1 }
   0xa   :  { %p108_p4 = pnand %p107_p3, %p101_p0 }
   0xc   :  { %111 = shalt.err (!%p108_p4)
}
   0xd   :  { %27 = dma.hbm_to_vmem [thread:$0]  %s167_s1, 64, %s25_s13, [#allocation4]  }
   0xe   :  { %132 = dma.done.wait [#allocation6], 16  }
   0xf   :  { %133 = vsyncadd [#allocation6], 4294967280 }
  0x10   :  { %134 = dma.done.wait [#allocation4], 64  }
  0x11   :  { %135 = vsyncadd [#allocation4], 4294967232 }
  0x12   :  { %34 = sfence }
  0x13   :  { %v140_v0 = vmov 0.0   ;;  %v41_v1 = vld [vmem:[#allocation7] sm:$0x3]  ;;  %v44_v3 = vld [vmem:[#allocation7 + $0x2] sm:$0x3]  ;;  %vm51_vm0 = vcmask 1041408  }
  0x14   :  { %39 = vst [vmem:[#allocation2] sm:$0x3] %v140_v0  ;;  %s56_s0 = sld [smem:[#allocation3]]  ;;  %s141_s1 = smov [#allocation8]  }
  0x15   :  { %s79_s17 = sld [smem:[#allocation3 + $0x1]]  ;;  %s69_s18 = sshll.u32 %s141_s1, 4  ;;  %s70_s18 = int_to_ptr.vmem [resolvable:$true] %s69_s18 }
  0x16   :  { %s112_s19 = scalar_lea.vmem %s70_s18, 32  ;;  %p117_p6 = scmp.lt.s32.totalorder %s70_s18, %s70_s18 }
  0x17   :  { %p113_p5 = scmp.ne.s32.totalorder %s70_s18, %s112_s19  ;;  %p118_p7 = scmp.lt.s32.totalorder %s112_s19, %s112_s19 }
  0x19   :  { %p119_p8 = por %p118_p7, %p117_p6 }
  0x1a   :  { %v57_v9 = vstv %s56_s0 }
  0x1b   :  { %v40_v2 = vld [vmem:[#allocation2] sm:$0x3]  ;;  %v60_v11 = vstv %s79_s17  ;;  %p120_p9 = pnand %p119_p8, %p113_p5 }
  0x1c   :  { %v42_v4 = vadd.f32 %v41_v1, %v40_v2 }
  0x1e   :  { %v45_v5 = vadd.f32 %v44_v3, %v42_v4 }
  0x20   :  { %46 = vst [vmem:[#allocation2] sm:$0x3] %v45_v5 }
  0x27   :  { %v50_v6 = vld [vmem:[#allocation2] sm:$0x3] }
  0x28   :  { %v52_v7 = vsel %vm51_vm0, %v50_v6, 0.0 }
  0x29   :  { %53 = vadd.xlane.f32.xlu0 %v52_v7 }
  0xb2   :  { %v54_v8 = vpop.xlane.xlu0 %53 }
  0xb3   :  { %v55_v10 = vmul.f32 0.00390625, %v54_v8 }
  0xb5   :  { %v58_v12 = vmul.f32 %v57_v9, %v55_v10 }
  0xb7   :  { %v61_v13 = vadd.f32 %v60_v11, %v58_v12 }
  0xb9   :  { %62 = vst [vmem:[#allocation8] sm:$0x3] %v61_v13 }
  0xba   :  { %123 = shalt.err (!%p120_p9)
}
  0xbb   :  { %72 = dma.vmem_to_hbm [thread:$0]  %s70_s18, 32, %s168_s2, [#allocation5]  }
  0xbc   :  { %136 = dma.done.wait [#allocation5], 32  }
  0xbd   :  { %137 = vsyncadd [#allocation5], 4294967264 }
  0xbe   :  { %76 = vsyncpa [#allocation4], 1 }
  0xbf   :  { %77 = vsyncpa [#allocation5], 1 }
  0xc0   :  { %78 = vsyncpa [#allocation6], 1 }

</bundles_post_ra>
